<compile_context>
chip_gen: v5e
topology: v5e:2x2
jax: 0.10.0
libtpu: 0.0.40
codegen_flags: <defaults>
</compile_context>

<pallas_src>
import functools

import jax
import jax.numpy as jnp
from jax.experimental import pallas as pl
from jax.experimental.pallas import tpu as pltpu

LN_EPS = 1e-5  # nn.LayerNorm default
_MIB = 1024 * 1024


def _round_up(n, m):
    return (n + m - 1) // m * m


def _vmem_capacity_bytes():
    try:
        return int(pltpu.get_tpu_info().vmem_capacity_bytes)
    except Exception:
        return 128 * _MIB  # v5e/v6e-like default if the query is unavailable


# --------------------------------------------------------------------------- #
# Kernel
# --------------------------------------------------------------------------- #
def dense_block_kernel(x_ref, w1_ref, p_ref, w2_ref, o_ref, *,
                       hidden_real, hid_p, out_p):
    """One batch tile: (x @ w1 + b1) -> LayerNorm -> ReLU -> (@ w2 + b2)."""
    # Packed params: row 0 = b1, 1 = gamma, 2 = beta, 3 = b2 (all zero-padded).
    b1 = p_ref[0:1, 0:hid_p]
    gamma = p_ref[1:2, 0:hid_p]
    beta = p_ref[2:3, 0:hid_p]
    b2 = p_ref[3:4, 0:out_p]

    # Linear 1: bf16 operands on the MXU, f32 accumulation (x arrives as bf16).
    h = jnp.dot(x_ref[...], w1_ref[...], preferred_element_type=jnp.float32)
    h = h + b1

    # LayerNorm over the real hidden columns. Padded columns of h are exactly 0
    # (zero w1 cols / b1), so the full-width sum equals the real-column sum; the
    # variance uses the centered, lane-masked form (no E[h^2]-mean^2 cancellation).
    inv_n = jnp.float32(1.0 / hidden_real)
    mean = jnp.sum(h, axis=-1, keepdims=True) * inv_n
    diff = h - mean
    if hidden_real != hid_p:
        lane = jax.lax.broadcasted_iota(jnp.int32, (1, hid_p), 1)
        diff = jnp.where(lane < hidden_real, diff, 0.0)
    var = jnp.sum(diff * diff, axis=-1, keepdims=True) * inv_n
    inv = jax.lax.rsqrt(var + LN_EPS)              # EUP slot, effectively free
    h = diff * (inv * gamma) + beta                # gamma folded into the scale
    # Padded lanes stay exactly 0 (diff, gamma, beta are 0 there).

    # ReLU.
    h = jnp.maximum(h, 0.0)

    # Linear 2: bf16 operands, f32 accumulation.
    y = jnp.dot(h.astype(jnp.bfloat16), w2_ref[...],
                preferred_element_type=jnp.float32)
    o_ref[...] = (y + b2).astype(o_ref.dtype)


# --------------------------------------------------------------------------- #
# Parameter preparation (hoisted out of the per-call path)
# --------------------------------------------------------------------------- #
def prepare_dense_block_params(w1, b1, gamma, beta, w2, b2):
    """Pad + bf16-cast the weights once; reuse across calls.

    w1: (in, hidden), w2: (hidden, out) — i.e. transposed vs. torch Linear.weight.
    """
    in_size, hidden = w1.shape
    hidden2, out_size = w2.shape
    assert hidden2 == hidden
    in_p = _round_up(in_size, 128)
    hid_p = _round_up(hidden, 128)
    out_p = _round_up(out_size, 128)

    w1p = jnp.zeros((in_p, hid_p), jnp.bfloat16).at[:in_size, :hidden].set(
        w1.astype(jnp.bfloat16))
    w2p = jnp.zeros((hid_p, out_p), jnp.bfloat16).at[:hidden, :out_size].set(
        w2.astype(jnp.bfloat16))

    # One (8, P) f32 block: a (1, X) block occupies a full (8, 128) sublane tile
    # anyway, so merging the four small params costs no extra VMEM.
    P = max(hid_p, out_p)
    params = jnp.zeros((8, P), jnp.float32)
    params = params.at[0, :hidden].set(b1.astype(jnp.float32))
    params = params.at[1, :hidden].set(gamma.astype(jnp.float32))
    params = params.at[2, :hidden].set(beta.astype(jnp.float32))
    params = params.at[3, :out_size].set(b2.astype(jnp.float32))

    meta = dict(in_size=in_size, hidden=hidden, out_size=out_size,
                in_p=in_p, hid_p=hid_p, out_p=out_p)
    return w1p, params, w2p, meta


# --------------------------------------------------------------------------- #
# Tiling policy
# --------------------------------------------------------------------------- #
def _pick_block_b(B, in_p, hid_p, out_p, vmem_bytes):
    """Batch-tile rows: single tile for small B, otherwise VMEM-derived."""
    two_tc = vmem_bytes <= 64 * _MIB   # v7x-like: 2 TCs share the parallel axis
    bq = _round_up(max(B, 1), 16)      # bf16 sublane pack
    if bq <= 256:
        return bq                      # splitting only adds ~0.35 us/step overhead

    # Per-row VMEM bytes: double-buffered bf16 x + f32 out tiles + f32 h temps.
    per_row = 2 * in_p * 2 + 2 * out_p * 4 + 4 * hid_p * 4
    resident = (in_p * hid_p + hid_p * out_p) * 2 + 8 * max(hid_p, out_p) * 4
    budget = max(vmem_bytes // 2 - resident, 64 * per_row)
    cap = 512 if two_tc else 1024
    cap = min(cap, max(budget // per_row // 16 * 16, 64))

    if two_tc:
        # Even grid with >= 2 tiles per TensorCore: keeps both cores busy and
        # leaves each core prefetch/writeback overlap.
        n_tiles = max(pl.cdiv(bq, cap), 4)
        n_tiles += n_tiles % 2
    else:
        n_tiles = pl.cdiv(bq, cap)
    return min(_round_up(pl.cdiv(bq, n_tiles), 16), cap)


# --------------------------------------------------------------------------- #
# pallas_call wrapper
# --------------------------------------------------------------------------- #
def _dense_block_call(xp, w1p, params, w2p, *, block_b, hidden, hid_p, out_p,
                      out_dtype, vmem_limit, single_buffer_weights):
    B_p, in_p = xp.shape
    grid = (B_p // block_b,)
    const_mode = pl.Buffered(1) if single_buffer_weights else None
    kernel = functools.partial(dense_block_kernel, hidden_real=hidden,
                               hid_p=hid_p, out_p=out_p)
    return pl.pallas_call(
        kernel,
        out_shape=jax.ShapeDtypeStruct((B_p, out_p), out_dtype),
        grid_spec=pltpu.PrefetchScalarGridSpec(
            num_scalar_prefetch=0,
            grid=grid,
            in_specs=[
                pl.BlockSpec((block_b, in_p), lambda i: (i, 0)),     # streamed x
                pl.BlockSpec((in_p, hid_p), lambda i: (0, 0),
                             pipeline_mode=const_mode),              # w1 resident
                pl.BlockSpec(params.shape, lambda i: (0, 0),
                             pipeline_mode=const_mode),              # packed params
                pl.BlockSpec((hid_p, out_p), lambda i: (0, 0),
                             pipeline_mode=const_mode),              # w2 resident
            ],
            out_specs=pl.BlockSpec((block_b, out_p), lambda i: (i, 0)),
        ),
        compiler_params=pltpu.CompilerParams(
            dimension_semantics=("parallel",),
            vmem_limit_bytes=vmem_limit),
    )(xp, w1p, params, w2p)


def dense_block_padded(x, w1p, params, w2p, meta, *, block_b=None, out_dtype=None):
    """Run the fused DenseBlock using pre-padded params. x: (B, in_size)."""
    B, in_size = x.shape
    assert in_size == meta["in_size"]
    in_p, hid_p, out_p = meta["in_p"], meta["hid_p"], meta["out_p"]
    hidden, out_size = meta["hidden"], meta["out_size"]
    out_dtype = out_dtype if out_dtype is not None else x.dtype

    vmem_bytes = _vmem_capacity_bytes()
    if block_b is None:
        block_b = _pick_block_b(B, in_p, hid_p, out_p, vmem_bytes)
    B_p = _round_up(B, block_b)

    # Pad + bf16-cast x in one pass (halves the streamed HBM->VMEM bytes).
    xp = jnp.zeros((B_p, in_p), jnp.bfloat16).at[:B, :in_size].set(
        x.astype(jnp.bfloat16))

    # Generation-aware VMEM limit: headroom on v7x (64 MiB/TC), allow the larger
    # tiles v5e/v6e's 128 MiB can hold.
    est = (2 * block_b * in_p * 2 + 2 * block_b * out_p * 4
           + (in_p * hid_p + hid_p * out_p) * 2
           + 8 * max(hid_p, out_p) * 4
           + 4 * block_b * hid_p * 4)
    hard_cap = 56 * _MIB if vmem_bytes <= 64 * _MIB else 100 * _MIB
    vmem_limit = int(min(max(2 * est, 32 * _MIB), hard_cap))

    call = functools.partial(
        _dense_block_call, block_b=block_b, hidden=hidden, hid_p=hid_p,
        out_p=out_p, out_dtype=out_dtype, vmem_limit=vmem_limit)
    try:
        out_padded = call(xp, w1p, params, w2p, single_buffer_weights=True)
    except Exception:
        # Fallback if this JAX build rejects pl.Buffered(1) on pallas_call specs.
        out_padded = call(xp, w1p, params, w2p, single_buffer_weights=False)
    return out_padded[:B, :out_size]


def dense_block(x, w1, b1, gamma, beta, w2, b2, *, block_b=None, out_dtype=None):
    """Convenience wrapper (pads weights per call). For repeated calls, hoist
    prepare_dense_block_params() and call dense_block_padded() directly."""
    w1p, params, w2p, meta = prepare_dense_block_params(w1, b1, gamma, beta, w2, b2)
    return dense_block_padded(x, w1p, params, w2p, meta,
                              block_b=block_b, out_dtype=out_dtype)


# --------------------------------------------------------------------------- #
# Reference + test
# --------------------------------------------------------------------------- #
def reference(x, w1, b1, gamma, beta, w2, b2, *, gemm_dtype=jnp.float32):
    """Pure-JAX reference; gemm_dtype selects matmul operand precision."""
    h = jnp.dot(x.astype(gemm_dtype), w1.astype(gemm_dtype),
                preferred_element_type=jnp.float32) + b1
    mean = h.mean(-1, keepdims=True)
    var = ((h - mean) ** 2).mean(-1, keepdims=True)
    h = (h - mean) / jnp.sqrt(var + LN_EPS) * gamma + beta
    h = jnp.maximum(h, 0.0)
    return jnp.dot(h.astype(gemm_dtype), w2.astype(gemm_dtype),
                   preferred_element_type=jnp.float32) + b2


if __name__ == "__main__":
    # Small shapes consistent with the module.
    batch, in_size, hidden_size, out_size = 64, 32, 64, 32

    key = jax.random.PRNGKey(0)
    kx, k1, kb1, kg, kbt, k2, kb2 = jax.random.split(key, 7)

    x = jax.random.normal(kx, (batch, in_size), dtype=jnp.float32)

    # PyTorch Linear stores (out, in); we build the transposed (in, out) form.
    w1 = jax.random.normal(k1, (in_size, hidden_size), jnp.float32) * 0.1
    b1 = jax.random.normal(kb1, (hidden_size,), jnp.float32) * 0.1
    gamma = 1.0 + 0.1 * jax.random.normal(kg, (hidden_size,), jnp.float32)
    beta = 0.1 * jax.random.normal(kbt, (hidden_size,), jnp.float32)
    w2 = jax.random.normal(k2, (hidden_size, out_size), jnp.float32) * 0.1
    b2 = jax.random.normal(kb2, (out_size,), jnp.float32) * 0.1

    # Pad/cast weights once (hoisted out of the per-call path), then run.
    w1p, params, w2p, meta = prepare_dense_block_params(w1, b1, gamma, beta, w2, b2)
    out = dense_block_padded(x, w1p, params, w2p, meta)
    out = jax.block_until_ready(out)
    assert out.shape == (batch, out_size)

    # Tight check against a reference using the same bf16 GEMM operand policy.
    ref_bf16 = reference(x, w1, b1, gamma, beta, w2, b2, gemm_dtype=jnp.bfloat16)
    assert jnp.allclose(out, ref_bf16, atol=1e-2, rtol=1e-2), \
        "mismatch vs bf16-matched reference"

    # Loose check against full-f32 module semantics (bf16 GEMM rounding only).
    ref_f32 = reference(x, w1, b1, gamma, beta, w2, b2, gemm_dtype=jnp.float32)
    assert jnp.allclose(out, ref_f32, atol=1e-1, rtol=1e-1), \
        "mismatch vs f32 reference"

    print("KERNEL_OK")
</pallas_src>

<mosaic_0001>
module attributes {stable_mosaic.version = 11 : i64} {
  func.func @dense_block_kernel(%arg0: i32, %arg1: memref<64x128xbf16, #tpu.memory_space<vmem>>, %arg2: memref<128x128xbf16, #tpu.memory_space<vmem>>, %arg3: memref<8x128xf32, #tpu.memory_space<vmem>>, %arg4: memref<128x128xbf16, #tpu.memory_space<vmem>>, %arg5: memref<64x128xf32, #tpu.memory_space<vmem>>) attributes {dimension_semantics = [#tpu.dimension_semantics<parallel>], iteration_bounds = array<i64: 1>, scalar_prefetch = 0 : i64, scratch_operands = 0 : i64, tpu.core_type = #tpu.core_type<tc>, window_params = [{transform_indices = @transform_0, window_bounds = array<i64: 64, 128>}, {pipeline_mode = #tpu.pipeline_mode<synchronous>, transform_indices = @transform_1, window_bounds = array<i64: 128, 128>}, {pipeline_mode = #tpu.pipeline_mode<synchronous>, transform_indices = @transform_2, window_bounds = array<i64: 8, 128>}, {pipeline_mode = #tpu.pipeline_mode<synchronous>, transform_indices = @transform_3, window_bounds = array<i64: 128, 128>}, {transform_indices = @transform_4, window_bounds = array<i64: 64, 128>}]} {
    %c0 = arith.constant 0 : index
    %c0_0 = arith.constant 0 : index
    %0 = vector.load %arg3[%c0, %c0_0] : memref<8x128xf32, #tpu.memory_space<vmem>>, vector<1x128xf32>
    %c1 = arith.constant 1 : index
    %c0_1 = arith.constant 0 : index
    %1 = vector.load %arg3[%c1, %c0_1] : memref<8x128xf32, #tpu.memory_space<vmem>>, vector<1x128xf32>
    %c2 = arith.constant 2 : index
    %c0_2 = arith.constant 0 : index
    %2 = vector.load %arg3[%c2, %c0_2] : memref<8x128xf32, #tpu.memory_space<vmem>>, vector<1x128xf32>
    %c3 = arith.constant 3 : index
    %c0_3 = arith.constant 0 : index
    %3 = vector.load %arg3[%c3, %c0_3] : memref<8x128xf32, #tpu.memory_space<vmem>>, vector<1x128xf32>
    %c0_4 = arith.constant 0 : index
    %c0_5 = arith.constant 0 : index
    %4 = vector.load %arg1[%c0_4, %c0_5] : memref<64x128xbf16, #tpu.memory_space<vmem>>, vector<64x128xbf16>
    %c0_6 = arith.constant 0 : index
    %c0_7 = arith.constant 0 : index
    %5 = vector.load %arg2[%c0_6, %c0_7] : memref<128x128xbf16, #tpu.memory_space<vmem>>, vector<128x128xbf16>
    %cst = arith.constant dense<0.000000e+00> : vector<64x128xf32>
    %6 = tpu.matmul %4, %5, %cst {dimension_numbers = #tpu.dot_dimension_numbers<[1], [0], [0], [1], [0, 0, 1, 1], [], []>} : vector<64x128xbf16>, vector<128x128xbf16>, vector<64x128xf32> -> vector<64x128xf32>
    %7 = vector.broadcast %0 : vector<1x128xf32> to vector<64x128xf32>
    %8 = arith.addf %6, %7 : vector<64x128xf32>
    %cst_8 = arith.constant dense<0.000000e+00> : vector<64xf32>
    %9 = vector.multi_reduction <add>, %8, %cst_8 [1] : vector<64x128xf32> to vector<64xf32>
    %10 = vector.shape_cast %9 : vector<64xf32> to vector<64x1xf32>
    %cst_9 = arith.constant 1.562500e-02 : f32
    %11 = vector.broadcast %cst_9 : f32 to vector<64x1xf32>
    %12 = arith.mulf %10, %11 : vector<64x1xf32>
    %13 = vector.broadcast %12 : vector<64x1xf32> to vector<64x128xf32>
    %14 = arith.subf %8, %13 : vector<64x128xf32>
    %15 = tpu.iota {dimensions = array<i32: 1>} : vector<1x128xi32>
    %c64_i32 = arith.constant 64 : i32
    %16 = vector.broadcast %c64_i32 : i32 to vector<1x128xi32>
    %17 = arith.cmpi slt, %15, %16 : vector<1x128xi32>
    %cst_10 = arith.constant 0.000000e+00 : f32
    %18 = vector.shape_cast %17 : vector<1x128xi1> to vector<1x128xi1>
    %19 = vector.broadcast %18 : vector<1x128xi1> to vector<64x128xi1>
    %20 = vector.broadcast %cst_10 : f32 to vector<64x128xf32>
    %21 = arith.select %19, %14, %20 : vector<64x128xi1>, vector<64x128xf32>
    %22 = arith.mulf %21, %21 : vector<64x128xf32>
    %cst_11 = arith.constant dense<0.000000e+00> : vector<64xf32>
    %23 = vector.multi_reduction <add>, %22, %cst_11 [1] : vector<64x128xf32> to vector<64xf32>
    %24 = vector.shape_cast %23 : vector<64xf32> to vector<64x1xf32>
    %cst_12 = arith.constant 1.562500e-02 : f32
    %25 = vector.broadcast %cst_12 : f32 to vector<64x1xf32>
    %26 = arith.mulf %24, %25 : vector<64x1xf32>
    %cst_13 = arith.constant 9.99999974E-6 : f32
    %27 = vector.broadcast %cst_13 : f32 to vector<64x1xf32>
    %28 = arith.addf %26, %27 : vector<64x1xf32>
    %29 = math.rsqrt %28 : vector<64x1xf32>
    %30 = vector.broadcast %29 : vector<64x1xf32> to vector<64x128xf32>
    %31 = vector.broadcast %1 : vector<1x128xf32> to vector<64x128xf32>
    %32 = arith.mulf %30, %31 : vector<64x128xf32>
    %33 = arith.mulf %21, %32 : vector<64x128xf32>
    %34 = vector.broadcast %2 : vector<1x128xf32> to vector<64x128xf32>
    %35 = arith.addf %33, %34 : vector<64x128xf32>
    %cst_14 = arith.constant 0.000000e+00 : f32
    %36 = vector.broadcast %cst_14 : f32 to vector<64x128xf32>
    %37 = arith.maximumf %35, %36 : vector<64x128xf32>
    %38 = arith.truncf %37 : vector<64x128xf32> to vector<64x128xbf16>
    %c0_15 = arith.constant 0 : index
    %c0_16 = arith.constant 0 : index
    %39 = vector.load %arg4[%c0_15, %c0_16] : memref<128x128xbf16, #tpu.memory_space<vmem>>, vector<128x128xbf16>
    %cst_17 = arith.constant dense<0.000000e+00> : vector<64x128xf32>
    %40 = tpu.matmul %38, %39, %cst_17 {dimension_numbers = #tpu.dot_dimension_numbers<[1], [0], [0], [1], [0, 0, 1, 1], [], []>} : vector<64x128xbf16>, vector<128x128xbf16>, vector<64x128xf32> -> vector<64x128xf32>
    %41 = vector.broadcast %3 : vector<1x128xf32> to vector<64x128xf32>
    %42 = arith.addf %40, %41 : vector<64x128xf32>
    %c0_18 = arith.constant 0 : index
    %c0_19 = arith.constant 0 : index
    %43 = vector.load %arg5[%c0_18, %c0_19] : memref<64x128xf32, #tpu.memory_space<vmem>>, vector<64x128xf32>
    tpu.vector_store %arg5[%c0_18, %c0_19], %42 {strides = array<i32>} : memref<64x128xf32, #tpu.memory_space<vmem>>, vector<64x128xf32>,
    return
  }
  func.func @transform_0(%arg0: i32) -> (i32, i32) {
    %c0_i32 = arith.constant 0 : i32
    %c0_i32_0 = arith.constant 0 : i32
    return %arg0, %c0_i32 : i32, i32
  }
  func.func @transform_1(%arg0: i32) -> (i32, i32) {
    %c0_i32 = arith.constant 0 : i32
    %c0_i32_0 = arith.constant 0 : i32
    %c0_i32_1 = arith.constant 0 : i32
    return %c0_i32, %c0_i32_0 : i32, i32
  }
  func.func @transform_2(%arg0: i32) -> (i32, i32) {
    %c0_i32 = arith.constant 0 : i32
    %c0_i32_0 = arith.constant 0 : i32
    %c0_i32_1 = arith.constant 0 : i32
    return %c0_i32, %c0_i32_0 : i32, i32
  }
  func.func @transform_3(%arg0: i32) -> (i32, i32) {
    %c0_i32 = arith.constant 0 : i32
    %c0_i32_0 = arith.constant 0 : i32
    %c0_i32_1 = arith.constant 0 : i32
    return %c0_i32, %c0_i32_0 : i32, i32
  }
  func.func @transform_4(%arg0: i32) -> (i32, i32) {
    %c0_i32 = arith.constant 0 : i32
    %c0_i32_0 = arith.constant 0 : i32
    return %arg0, %c0_i32 : i32, i32
  }
}

module attributes {stable_mosaic.version = 11 : i64} {
  func.func @dense_block_kernel(%arg0: i32, %arg1: memref<64x128xbf16, #tpu.memory_space<vmem>>, %arg2: memref<128x128xbf16, #tpu.memory_space<vmem>>, %arg3: memref<8x128xf32, #tpu.memory_space<vmem>>, %arg4: memref<128x128xbf16, #tpu.memory_space<vmem>>, %arg5: memref<64x128xf32, #tpu.memory_space<vmem>>) attributes {dimension_semantics = [#tpu.dimension_semantics<parallel>], iteration_bounds = array<i64: 1>, scalar_prefetch = 0 : i64, scratch_operands = 0 : i64, tpu.core_type = #tpu.core_type<tc>, window_params = [{transform_indices = @transform_0, window_bounds = array<i64: 64, 128>}, {pipeline_mode = #tpu.pipeline_mode<synchronous>, transform_indices = @transform_1, window_bounds = array<i64: 128, 128>}, {pipeline_mode = #tpu.pipeline_mode<synchronous>, transform_indices = @transform_2, window_bounds = array<i64: 8, 128>}, {pipeline_mode = #tpu.pipeline_mode<synchronous>, transform_indices = @transform_3, window_bounds = array<i64: 128, 128>}, {transform_indices = @transform_4, window_bounds = array<i64: 64, 128>}]} {
    %c0 = arith.constant 0 : index
    %c0_0 = arith.constant 0 : index
    %0 = vector.load %arg3[%c0, %c0_0] : memref<8x128xf32, #tpu.memory_space<vmem>>, vector<1x128xf32>
    %c1 = arith.constant 1 : index
    %c0_1 = arith.constant 0 : index
    %1 = vector.load %arg3[%c1, %c0_1] : memref<8x128xf32, #tpu.memory_space<vmem>>, vector<1x128xf32>
    %c2 = arith.constant 2 : index
    %c0_2 = arith.constant 0 : index
    %2 = vector.load %arg3[%c2, %c0_2] : memref<8x128xf32, #tpu.memory_space<vmem>>, vector<1x128xf32>
    %c3 = arith.constant 3 : index
    %c0_3 = arith.constant 0 : index
    %3 = vector.load %arg3[%c3, %c0_3] : memref<8x128xf32, #tpu.memory_space<vmem>>, vector<1x128xf32>
    %c0_4 = arith.constant 0 : index
    %c0_5 = arith.constant 0 : index
    %4 = vector.load %arg1[%c0_4, %c0_5] : memref<64x128xbf16, #tpu.memory_space<vmem>>, vector<64x128xbf16>
    %c0_6 = arith.constant 0 : index
    %c0_7 = arith.constant 0 : index
    %5 = vector.load %arg2[%c0_6, %c0_7] : memref<128x128xbf16, #tpu.memory_space<vmem>>, vector<128x128xbf16>
    %cst = arith.constant dense<0.000000e+00> : vector<64x128xf32>
    %6 = tpu.matmul %4, %5, %cst {dimension_numbers = #tpu.dot_dimension_numbers<[1], [0], [0], [1], [0, 0, 1, 1], [], []>} : vector<64x128xbf16>, vector<128x128xbf16>, vector<64x128xf32> -> vector<64x128xf32>
    %7 = vector.broadcast %0 : vector<1x128xf32> to vector<64x128xf32>
    %8 = arith.addf %6, %7 : vector<64x128xf32>
    %cst_8 = arith.constant dense<0.000000e+00> : vector<64xf32>
    %9 = vector.multi_reduction <add>, %8, %cst_8 [1] : vector<64x128xf32> to vector<64xf32>
    %10 = vector.shape_cast %9 : vector<64xf32> to vector<64x1xf32>
    %cst_9 = arith.constant 1.562500e-02 : f32
    %11 = vector.broadcast %cst_9 : f32 to vector<64x1xf32>
    %12 = arith.mulf %10, %11 : vector<64x1xf32>
    %13 = vector.broadcast %12 : vector<64x1xf32> to vector<64x128xf32>
    %14 = arith.subf %8, %13 : vector<64x128xf32>
    %15 = tpu.iota {dimensions = array<i32: 1>} : vector<1x128xi32>
    %c64_i32 = arith.constant 64 : i32
    %16 = vector.broadcast %c64_i32 : i32 to vector<1x128xi32>
    %17 = arith.cmpi slt, %15, %16 : vector<1x128xi32>
    %cst_10 = arith.constant 0.000000e+00 : f32
    %18 = vector.shape_cast %17 : vector<1x128xi1> to vector<1x128xi1>
    %19 = vector.broadcast %18 : vector<1x128xi1> to vector<64x128xi1>
    %20 = vector.broadcast %cst_10 : f32 to vector<64x128xf32>
    %21 = arith.select %19, %14, %20 : vector<64x128xi1>, vector<64x128xf32>
    %22 = arith.mulf %21, %21 : vector<64x128xf32>
    %cst_11 = arith.constant dense<0.000000e+00> : vector<64xf32>
    %23 = vector.multi_reduction <add>, %22, %cst_11 [1] : vector<64x128xf32> to vector<64xf32>
    %24 = vector.shape_cast %23 : vector<64xf32> to vector<64x1xf32>
    %cst_12 = arith.constant 1.562500e-02 : f32
    %25 = vector.broadcast %cst_12 : f32 to vector<64x1xf32>
    %26 = arith.mulf %24, %25 : vector<64x1xf32>
    %cst_13 = arith.constant 9.99999974E-6 : f32
    %27 = vector.broadcast %cst_13 : f32 to vector<64x1xf32>
    %28 = arith.addf %26, %27 : vector<64x1xf32>
    %29 = math.rsqrt %28 : vector<64x1xf32>
    %30 = vector.broadcast %29 : vector<64x1xf32> to vector<64x128xf32>
    %31 = vector.broadcast %1 : vector<1x128xf32> to vector<64x128xf32>
    %32 = arith.mulf %30, %31 : vector<64x128xf32>
    %33 = arith.mulf %21, %32 : vector<64x128xf32>
    %34 = vector.broadcast %2 : vector<1x128xf32> to vector<64x128xf32>
    %35 = arith.addf %33, %34 : vector<64x128xf32>
    %cst_14 = arith.constant 0.000000e+00 : f32
    %36 = vector.broadcast %cst_14 : f32 to vector<64x128xf32>
    %37 = arith.maximumf %35, %36 : vector<64x128xf32>
    %38 = arith.truncf %37 : vector<64x128xf32> to vector<64x128xbf16>
    %c0_15 = arith.constant 0 : index
    %c0_16 = arith.constant 0 : index
    %39 = vector.load %arg4[%c0_15, %c0_16] : memref<128x128xbf16, #tpu.memory_space<vmem>>, vector<128x128xbf16>
    %cst_17 = arith.constant dense<0.000000e+00> : vector<64x128xf32>
    %40 = tpu.matmul %38, %39, %cst_17 {dimension_numbers = #tpu.dot_dimension_numbers<[1], [0], [0], [1], [0, 0, 1, 1], [], []>} : vector<64x128xbf16>, vector<128x128xbf16>, vector<64x128xf32> -> vector<64x128xf32>
    %41 = vector.broadcast %3 : vector<1x128xf32> to vector<64x128xf32>
    %42 = arith.addf %40, %41 : vector<64x128xf32>
    %c0_18 = arith.constant 0 : index
    %c0_19 = arith.constant 0 : index
    %43 = vector.load %arg5[%c0_18, %c0_19] : memref<64x128xf32, #tpu.memory_space<vmem>>, vector<64x128xf32>
    tpu.vector_store %arg5[%c0_18, %c0_19], %42 {strides = array<i32>} : memref<64x128xf32, #tpu.memory_space<vmem>>, vector<64x128xf32>,
    return
  }
  func.func @transform_0(%arg0: i32) -> (i32, i32) {
    %c0_i32 = arith.constant 0 : i32
    %c0_i32_0 = arith.constant 0 : i32
    return %arg0, %c0_i32 : i32, i32
  }
  func.func @transform_1(%arg0: i32) -> (i32, i32) {
    %c0_i32 = arith.constant 0 : i32
    %c0_i32_0 = arith.constant 0 : i32
    %c0_i32_1 = arith.constant 0 : i32
    return %c0_i32, %c0_i32_0 : i32, i32
  }
  func.func @transform_2(%arg0: i32) -> (i32, i32) {
    %c0_i32 = arith.constant 0 : i32
    %c0_i32_0 = arith.constant 0 : i32
    %c0_i32_1 = arith.constant 0 : i32
    return %c0_i32, %c0_i32_0 : i32, i32
  }
  func.func @transform_3(%arg0: i32) -> (i32, i32) {
    %c0_i32 = arith.constant 0 : i32
    %c0_i32_0 = arith.constant 0 : i32
    %c0_i32_1 = arith.constant 0 : i32
    return %c0_i32, %c0_i32_0 : i32, i32
  }
  func.func @transform_4(%arg0: i32) -> (i32, i32) {
    %c0_i32 = arith.constant 0 : i32
    %c0_i32_0 = arith.constant 0 : i32
    return %arg0, %c0_i32 : i32, i32
  }
}

</mosaic_0001>

<bundles_post_ra>
// kernel: tpu_custom_call.1
= control target key start
LH: loop header
LB: loop body
LE: loop exit
PB: predicated region body
PF: predicated region fallthrough
CT: control target
= control target key end

     0   :  { %9 = vsyncpa [#allocation3], 0  ;;  %s970_s0 = inlined_call_operand.hbm [shape: bf16[64,128], index: 0, kind: input, shape index: {}]   ;;  %s971_s1 = inlined_call_operand.hbm [shape: bf16[128,128], index: 1, kind: input, shape index: {}]   ;;  %s972_s2 = inlined_call_operand.hbm [shape: f32[8,128], index: 2, kind: input, shape index: {}]   ;;  %s973_s3 = inlined_call_operand.hbm [shape: bf16[128,128], index: 3, kind: input, shape index: {}]   ;;  %s974_s4 = inlined_call_operand.hbm [shape: f32[64,128], index: 4, kind: output, shape index: {}]  }
   0x1   :  { %10 = vsyncpa [#allocation6], 0 }
   0x2   :  { %11 = vsyncpa [#allocation9], 0 }
   0x3   :  { %12 = vsyncpa [#allocation4], 0  ;;  %s30_s17 = sshll.u32 %s971_s1, 4  ;;  %s808_s18 = smov [#allocation5]   ;;  %s31_s17 = int_to_ptr.hbm [resolvable:$true] %s30_s17 }
   0x4   :  { %s32_s19 = sshll.u32 %s808_s18, 4  ;;  %s17_s22 = sshll.u32 %s970_s0, 4  ;;  %s33_s19 = int_to_ptr.vmem [resolvable:$true] %s32_s19  ;;  %s18_s22 = int_to_ptr.hbm [resolvable:$true] %s17_s22 }
   0x5   :  { %s809_s23 = smov 64   ;;  %s810_s24 = smov 4  }
   0x6   :  { %38 = dma.hbm_to_vmem [thread:$0]  %s31_s17, 1024, %s33_s19, [#allocation6], %s809_s23, %s809_s23, %s810_s24  }
   0x7   :  { %s811_s25 = smov [#allocation2]   ;;  %s44_s29 = sshll.u32 %s972_s2, 4  ;;  %s45_s29 = int_to_ptr.hbm [resolvable:$true] %s44_s29 }
   0x8   :  { %s19_s26 = sshll.u32 %s811_s25, 4  ;;  %s54_s5 = sshll.u32 %s973_s3, 4  ;;  %s20_s26 = int_to_ptr.vmem [resolvable:$true] %s19_s26  ;;  %s55_s5 = int_to_ptr.hbm [resolvable:$true] %s54_s5 }
   0x9   :  { %25 = dma.hbm_to_vmem [thread:$0]  %s18_s22, 512, %s20_s26, [#allocation3], %s809_s23, %s809_s23, %s810_s24  }
   0xa   :  { %s812_s6 = smov [#allocation7]   ;;  %s813_s0 = smov [#allocation8]  }
   0xb   :  { %s46_s7 = sshll.u32 %s812_s6, 4  ;;  %s56_s8 = sshll.u32 %s813_s0, 4  ;;  %s47_s7 = int_to_ptr.vmem [resolvable:$true] %s46_s7  ;;  %s57_s8 = int_to_ptr.vmem [resolvable:$true] %s56_s8 }
   0xc   :  { %49 = dma.hbm_to_vmem [thread:$0]  %s45_s29, 128, %s47_s7, [#allocation6]  }
   0xd   :  { %62 = dma.hbm_to_vmem [thread:$0]  %s55_s5, 1024, %s57_s8, [#allocation9], %s809_s23, %s809_s23, %s810_s24  }
   0xe   :  { %800 = dma.done.wait [#allocation3], 512  }
   0xf   :  { %801 = vsyncadd [#allocation3], 4294966784 }
  0x10   :  { %802 = dma.done.wait [#allocation6], 1152  }
  0x11   :  { %803 = vsyncadd [#allocation6], 4294966144 }
  0x12   :  { %804 = dma.done.wait [#allocation9], 1024  }
  0x13   :  { %805 = vsyncadd [#allocation9], 4294966272  ;;  %v626_v0 = vld [vmem:[#allocation5 + $0x38] sm:$0xff]  ;;  %v625_v1 = vld [vmem:[#allocation5 + $0x30] sm:$0xff]  ;;  %v241_v29 = vlaneseq  ;;  %s814_s2 = smov [#allocation10]   ;;  %s520_s11 = sshll.u32 %s974_s4, 4  ;;  %s521_s11 = int_to_ptr.hbm [resolvable:$true] %s520_s11 }
  0x14   :  { %180 = vmatpush.bf16.msra.mxu0 %v626_v0  ;;  %635 = vmatpush.bf16.msra.mxu2 %v626_v0  ;;  %v624_v2 = vld [vmem:[#allocation5 + $0x28] sm:$0xff]  ;;  %v623_v3 = vld [vmem:[#allocation5 + $0x20] sm:$0xff]  ;;  %v622_v4 = vld [vmem:[#allocation5 + $0x18] sm:$0xff]  ;;  %s518_s3 = sshll.u32 %s814_s2, 4  ;;  %s815_s12 = smov 128   ;;  %s519_s3 = int_to_ptr.vmem [resolvable:$true] %s518_s3 }
  0x15   :  { %v621_v5 = vld [vmem:[#allocation5 + $0x10] sm:$0xff]  ;;  %v620_v6 = vld [vmem:[#allocation5 + $0x8] sm:$0xff]  ;;  %v619_v7 = vld [vmem:[#allocation5] sm:$0xff]  ;;  %v242_v30 = vand.u32 127, %v241_v29  ;;  %s816_s13 = smov 8  }
  0x16   :  { %v615_v8 = vld [vmem:[#allocation2] sm:$0xff]  ;;  %v617_v9 = vld [vmem:[#allocation2 + $0x10] sm:$0xff]  ;;  %v616_v10 = vld [vmem:[#allocation2 + $0x8] sm:$0xff] }
  0x17   :  { %v618_v11 = vld [vmem:[#allocation2 + $0x18] sm:$0xff]  ;;  %v660_v12 = vld [vmem:[#allocation7] ss:$0 sm:$0xff]  ;;  %vm243_vm0 = vcmp.lt.s32.totalorder %v242_v30, 64 }
  0x18   :  { %181 = vmatpush.bf16.msra.mxu0 %v625_v1  ;;  %636 = vmatpush.bf16.msra.mxu2 %v625_v1 }
  0x1c   :  { %182 = vmatpush.bf16.msra.mxu0 %v624_v2  ;;  %637 = vmatpush.bf16.msra.mxu2 %v624_v2 }
  0x20   :  { %183 = vmatpush.bf16.msra.mxu0 %v623_v3  ;;  %638 = vmatpush.bf16.msra.mxu2 %v623_v3 }
  0x24   :  { %184 = vmatpush.bf16.msra.mxu0 %v622_v4  ;;  %639 = vmatpush.bf16.msra.mxu2 %v622_v4 }
  0x28   :  { %185 = vmatpush.bf16.msra.mxu0 %v621_v5  ;;  %640 = vmatpush.bf16.msra.mxu2 %v621_v5 }
  0x2c   :  { %186 = vmatpush.bf16.msra.mxu0 %v620_v6  ;;  %641 = vmatpush.bf16.msra.mxu2 %v620_v6 }
  0x30   :  { %187 = vmatpush.bf16.msra.mxu0 %v619_v7  ;;  %642 = vmatpush.bf16.msra.mxu2 %v619_v7  ;;  %v634_v7 = vld [vmem:[#allocation8 + $0x38] sm:$0xff] }
  0x31   :  { %477 = vmatpush.bf16.msra.mxu1 %v634_v7  ;;  %643 = vmatpush.bf16.msra.mxu3 %v634_v7 }
  0x33   :  { %188 = vmatmul.bf16.vlgmr.msra.gmra.mxu0 %v615_v8  ;;  %198 = vmatmul.bf16.vlgmr.msra.gmra.mxu2 %v617_v9  ;;  %v633_v8 = vld [vmem:[#allocation8 + $0x30] sm:$0xff]  ;;  %v632_v9 = vld [vmem:[#allocation8 + $0x28] sm:$0xff] }
  0x35   :  { %478 = vmatpush.bf16.msra.mxu1 %v633_v8  ;;  %644 = vmatpush.bf16.msra.mxu3 %v633_v8 }
  0x39   :  { %479 = vmatpush.bf16.msra.mxu1 %v632_v9  ;;  %645 = vmatpush.bf16.msra.mxu3 %v632_v9 }
  0x43   :  { %193 = vmatmul.bf16.gmra.mxu0 %v616_v10  ;;  %203 = vmatmul.bf16.gmra.mxu2 %v618_v11  ;;  %v631_v10 = vld [vmem:[#allocation8 + $0x20] sm:$0xff] }
  0x44   :  { %480 = vmatpush.bf16.msra.mxu1 %v631_v10  ;;  %646 = vmatpush.bf16.msra.mxu3 %v631_v10 }
  0xb0   :  { %v189_v13 = vpop.f32.mrf.mxu0 }
  0xb1   :  { %v190_v14 = vadd.f32 %v660_v12, %v189_v13 }
  0xb3   :  { %209 = vadd.xlane.f32.xlu1 %v190_v14 }
  0xb6   :  { %v199_v15 = vpop.f32.mrf.mxu2 }
  0xb7   :  { %v200_v16 = vadd.f32 %v660_v12, %v199_v15  ;;  %v629_v15 = vld [vmem:[#allocation8 + $0x10] sm:$0xff] }
  0xb8   :  { %v191_v17 = vpop.f32.mrf.mxu0 }
  0xb9   :  { %v192_v18 = vadd.f32 %v660_v12, %v191_v17  ;;  %217 = vadd.xlane.f32.xlu0 %v200_v16 }
  0xbb   :  { %211 = vadd.xlane.f32.xlu1 %v192_v18 }
  0xbe   :  { %v201_v19 = vpop.f32.mrf.mxu2 }
  0xbf   :  { %v202_v20 = vadd.f32 %v660_v12, %v201_v19 }
  0xc0   :  { %v194_v21 = vpop.f32.mrf.mxu0 }
  0xc1   :  { %219 = vadd.xlane.f32.xlu0 %v202_v20  ;;  %v195_v22 = vadd.f32 %v660_v12, %v194_v21 }
  0xc6   :  { %v204_v23 = vpop.f32.mrf.mxu2 }
  0xc7   :  { %v205_v24 = vadd.f32 %v660_v12, %v204_v23 }
  0xc8   :  { %v196_v25 = vpop.f32.mrf.mxu0 }
  0xc9   :  { %v197_v26 = vadd.f32 %v660_v12, %v196_v25  ;;  %221 = vadd.xlane.f32.xlu2 %v205_v24  ;;  %213 = vadd.xlane.f32.xlu0 %v195_v22 }
  0xcb   :  { %215 = vadd.xlane.f32.xlu1 %v197_v26 }
  0xce   :  { %v206_v27 = vpop.f32.mrf.mxu2 }
  0xcf   :  { %v207_v28 = vadd.f32 %v660_v12, %v206_v27  ;;  %v630_v12 = vld [vmem:[#allocation8 + $0x18] sm:$0xff] }
  0xd0   :  { %481 = vmatpush.bf16.msra.mxu1 %v630_v12  ;;  %647 = vmatpush.bf16.msra.mxu3 %v630_v12 }
  0xd1   :  { %223 = vadd.xlane.f32.xlu2 %v207_v28 }
  0xd4   :  { %482 = vmatpush.bf16.msra.mxu1 %v629_v15  ;;  %648 = vmatpush.bf16.msra.mxu3 %v629_v15 }
 0x126   :  { %v210_v31 = vpop.xlane.xlu1 %209 }
 0x127   :  { %v225_v32 = vmul.f32 0.015625, %v210_v31 }
 0x129   :  { %v233_v33 = vsub.f32 %v190_v14, %v225_v32 }
 0x12b   :  { %v855_v34 = vsel %vm243_vm0, %v233_v33, 0.0 }
 0x12c   :  { %v218_v35 = vpop.xlane.xlu0 %217  ;;  %v254_v36 = vmul.f32 %v855_v34, %v855_v34 }
 0x12d   :  { %v229_v37 = vmul.f32 0.015625, %v218_v35 }
 0x12e   :  { %262 = vadd.xlane.f32.xlu1 %v254_v36  ;;  %v212_v38 = vpop.xlane.xlu1 %211 }
 0x12f   :  { %v237_v39 = vsub.f32 %v200_v16, %v229_v37  ;;  %v226_v40 = vmul.f32 0.015625, %v212_v38 }
 0x131   :  { %v860_v41 = vsel %vm243_vm0, %v237_v39, 0.0  ;;  %v234_v43 = vsub.f32 %v192_v18, %v226_v40  ;;  %v628_v18 = vld [vmem:[#allocation8 + $0x8] sm:$0xff] }
 0x132   :  { %v258_v42 = vmul.f32 %v860_v41, %v860_v41  ;;  %483 = vmatpush.bf16.msra.mxu1 %v628_v18  ;;  %649 = vmatpush.bf16.msra.mxu3 %v628_v18 }
 0x133   :  { %v865_v47 = vsel %vm243_vm0, %v234_v43, 0.0 }
 0x134   :  { %270 = vadd.xlane.f32.xlu2 %v258_v42  ;;  %v220_v44 = vpop.xlane.xlu0 %219  ;;  %v255_v50 = vmul.f32 %v865_v47, %v865_v47 }
 0x135   :  { %v230_v45 = vmul.f32 0.015625, %v220_v44 }
 0x137   :  { %v238_v46 = vsub.f32 %v202_v20, %v230_v45 }
 0x139   :  { %v868_v48 = vsel %vm243_vm0, %v238_v46, 0.0 }
 0x13a   :  { %v259_v49 = vmul.f32 %v868_v48, %v868_v48 }
 0x13c   :  { %v222_v51 = vpop.xlane.xlu2 %221  ;;  %272 = vadd.xlane.f32.xlu0 %v259_v49  ;;  %v214_v52 = vpop.xlane.xlu0 %213  ;;  %264 = vadd.xlane.f32.xlu2 %v255_v50 }
 0x13d   :  { %v231_v53 = vmul.f32 0.015625, %v222_v51  ;;  %v227_v54 = vmul.f32 0.015625, %v214_v52 }
 0x13e   :  { %v216_v55 = vpop.xlane.xlu1 %215 }
 0x13f   :  { %v239_v56 = vsub.f32 %v205_v24, %v231_v53  ;;  %v235_v57 = vsub.f32 %v195_v22, %v227_v54  ;;  %v228_v58 = vmul.f32 0.015625, %v216_v55  ;;  %v627_v22 = vld [vmem:[#allocation8] sm:$0xff] }
 0x140   :  { %484 = vmatpush.bf16.msra.mxu1 %v627_v22  ;;  %650 = vmatpush.bf16.msra.mxu3 %v627_v22  ;;  %v930_v22 = vld [vmem:[#allocation7 + $0x2] ss:$0 sm:$0xff] }
 0x141   :  { %v875_v59 = vsel %vm243_vm0, %v239_v56, 0.0  ;;  %v878_v60 = vsel %vm243_vm0, %v235_v57, 0.0  ;;  %v236_v63 = vsub.f32 %v197_v26, %v228_v58  ;;  %v910_v57 = vld [vmem:[#allocation7 + $0x1] ss:$0 sm:$0xff] }
 0x142   :  { %v260_v61 = vmul.f32 %v875_v59, %v875_v59  ;;  %v256_v62 = vmul.f32 %v878_v60, %v878_v60 }
 0x143   :  { %v885_v3 = vsel %vm243_vm0, %v236_v63, 0.0 }
 0x144   :  { %v224_v0 = vpop.xlane.xlu2 %223  ;;  %274 = vadd.xlane.f32.xlu0 %v260_v61  ;;  %266 = vadd.xlane.f32.xlu2 %v256_v62  ;;  %v257_v6 = vmul.f32 %v885_v3, %v885_v3 }
 0x145   :  { %v232_v1 = vmul.f32 0.015625, %v224_v0 }
 0x147   :  { %v240_v2 = vsub.f32 %v207_v28, %v232_v1 }
 0x149   :  { %v888_v4 = vsel %vm243_vm0, %v240_v2, 0.0 }
 0x14a   :  { %v261_v5 = vmul.f32 %v888_v4, %v888_v4 }
 0x14c   :  { %276 = vadd.xlane.f32.xlu1 %v261_v5  ;;  %268 = vadd.xlane.f32.xlu0 %v257_v6 }
 0x1a1   :  { %v263_v11 = vpop.xlane.xlu1 %262 }
 0x1a2   :  { %v278_v13 = vmul.f32 0.015625, %v263_v11 }
 0x1a4   :  { %v286_v14 = vadd.f32 1e-05, %v278_v13 }
 0x1a6   :  { %664 = vrsqrt.f32 %v286_v14  ;;  %vm300_vm4 = vweird.f32 %v286_v14 }
 0x1a7   :  { %v271_v16 = vpop.xlane.xlu2 %270 }
 0x1a8   :  { %v282_v17 = vmul.f32 0.015625, %v271_v16 }
 0x1aa   :  { %v290_v19 = vadd.f32 1e-05, %v282_v17 }
 0x1ac   :  { %v665_v20 = vpop.eup %664  ;;  %666 = vrsqrt.f32 %v290_v19  ;;  %vm340_vm3 = vweird.f32 %v290_v19 }
 0x1ad   :  { %v295_v21 = vmul.f32 %v665_v20, %v286_v14  ;;  %vm301_vm2 = vweird.f32 %v665_v20 }
 0x1ae   :  { %vm903_vm6 = vmor %vm300_vm4, %vm301_vm2 }
 0x1af   :  { %v296_v23 = vmul.f32 %v665_v20, %v295_v21  ;;  %v273_v24 = vpop.xlane.xlu0 %272  ;;  %v265_v25 = vpop.xlane.xlu2 %264 }
 0x1b0   :  { %v283_v26 = vmul.f32 0.015625, %v273_v24  ;;  %v279_v27 = vmul.f32 0.015625, %v265_v25 }
 0x1b1   :  { %v297_v29 = vmul.f32 0.5, %v296_v23 }
 0x1b2   :  { %v667_v28 = vpop.eup %666  ;;  %v291_v30 = vadd.f32 1e-05, %v283_v26  ;;  %v287_v31 = vadd.f32 1e-05, %v279_v27 }
 0x1b3   :  { %v335_v32 = vmul.f32 %v667_v28, %v290_v19  ;;  %v298_v35 = vsub.f32 1.5, %v297_v29  ;;  %vm341_vm1 = vweird.f32 %v667_v28 }
 0x1b4   :  { %668 = vrsqrt.f32 %v291_v30  ;;  %vm898_vm5 = vmor %vm340_vm3, %vm341_vm1  ;;  %vm350_vm9 = vweird.f32 %v291_v30  ;;  %vm310_vm10 = vweird.f32 %v287_v31 }
 0x1b5   :  { %v336_v33 = vmul.f32 %v667_v28, %v335_v32  ;;  %670 = vrsqrt.f32 %v287_v31  ;;  %v299_v44 = vmul.f32 %v665_v20, %v298_v35 }
 0x1b7   :  { %v337_v36 = vmul.f32 0.5, %v336_v33  ;;  %v275_v37 = vpop.xlane.xlu0 %274  ;;  %v267_v38 = vpop.xlane.xlu2 %266  ;;  %v303_v58 = vsel %vm903_vm6, %v665_v20, %v299_v44 }
 0x1b8   :  { %v284_v39 = vmul.f32 0.015625, %v275_v37  ;;  %v280_v40 = vmul.f32 0.015625, %v267_v38  ;;  %v375_v8 = vmul.f32 %v910_v57, %v303_v58 }
 0x1b9   :  { %v338_v42 = vsub.f32 1.5, %v337_v36 }
 0x1ba   :  { %v669_v43 = vpop.eup %668  ;;  %v894_v45 = vadd.f32 1e-05, %v284_v39  ;;  %v896_v46 = vadd.f32 1e-05, %v280_v40  ;;  %v383_v21 = vmul.f32 %v375_v8, %v855_v34 }
 0x1bb   :  { %v671_v49 = vpop.eup %670  ;;  %v339_v50 = vmul.f32 %v667_v28, %v338_v42  ;;  %v345_v51 = vmul.f32 %v669_v43, %v291_v30  ;;  %vm351_vm7 = vweird.f32 %v669_v43 }
 0x1bc   :  { %v305_v53 = vmul.f32 %v671_v49, %v287_v31  ;;  %672 = vrsqrt.f32 %v894_v45  ;;  %vm311_vm8 = vweird.f32 %v671_v49  ;;  %vm352_vm11 = vmor %vm350_vm9, %vm351_vm7  ;;  %v392_v34 = vadd.f32 %v930_v22, %v383_v21 }
 0x1bd   :  { %v343_v55 = vsel %vm898_vm5, %v667_v28, %v339_v50  ;;  %v346_v56 = vmul.f32 %v669_v43, %v345_v51  ;;  %674 = vrsqrt.f32 %v896_v46  ;;  %vm312_vm12 = vmor %vm310_vm10, %vm311_vm8  ;;  %vm360_vm14 = vweird.f32 %v894_v45 }
 0x1be   :  { %v306_v61 = vmul.f32 %v671_v49, %v305_v53  ;;  %v379_v6 = vmul.f32 %v910_v57, %v343_v55  ;;  %vm320_vm0 = vweird.f32 %v896_v46 }
 0x1bf   :  { %v347_v62 = vmul.f32 0.5, %v346_v56  ;;  %v269_v63 = vpop.xlane.xlu0 %268  ;;  %v277_v0 = vpop.xlane.xlu1 %276 }
 0x1c0   :  { %v307_v1 = vmul.f32 0.5, %v306_v61  ;;  %v281_v2 = vmul.f32 0.015625, %v269_v63  ;;  %v285_v5 = vmul.f32 0.015625, %v277_v0  ;;  %v387_v18 = vmul.f32 %v379_v6, %v860_v41 }
 0x1c1   :  { %v348_v7 = vsub.f32 1.5, %v347_v62 }
 0x1c2   :  { %v916_v9 = vpop.eup %672  ;;  %v308_v10 = vsub.f32 1.5, %v307_v1  ;;  %v918_v11 = vadd.f32 1e-05, %v281_v2  ;;  %v920_v12 = vadd.f32 1e-05, %v285_v5  ;;  %v396_v29 = vadd.f32 %v930_v22, %v387_v18 }
 0x1c3   :  { %v675_v13 = vpop.eup %674  ;;  %v349_v14 = vmul.f32 %v669_v43, %v348_v7  ;;  %v355_v15 = vmul.f32 %v916_v9, %v894_v45  ;;  %vm361_vm13 = vweird.f32 %v916_v9  ;;  %v400_v45 = vmax.f32 %v392_v34, 0.0 }
 0x1c4   :  { %v309_v16 = vmul.f32 %v671_v49, %v308_v10  ;;  %v315_v17 = vmul.f32 %v675_v13, %v896_v46  ;;  %676 = vrsqrt.f32 %v918_v11  ;;  %vm321_vm15 = vweird.f32 %v675_v13  ;;  %vm945_vm1 = vmor %vm360_vm14, %vm361_vm13 }
 0x1c5   :  { %v353_v19 = vsel %vm352_vm11, %v669_v43, %v349_v14  ;;  %v356_v20 = vmul.f32 %v916_v9, %v355_v15  ;;  %678 = vrsqrt.f32 %v920_v12  ;;  %v404_v42 = vmax.f32 %v396_v29, 0.0  ;;  %vm322_vm2 = vmor %vm320_vm0, %vm321_vm15 }
 0x1c6   :  { %v313_v23 = vsel %vm312_vm12, %v671_v49, %v309_v16  ;;  %v316_v24 = vmul.f32 %v675_v13, %v315_v17  ;;  %v380_v25 = vmul.f32 %v910_v57, %v353_v19  ;;  %vm330_vm5 = vweird.f32 %v918_v11 }
 0x1c7   :  { %v357_v26 = vmul.f32 0.5, %v356_v20  ;;  %v376_v27 = vmul.f32 %v910_v57, %v313_v23  ;;  %vm370_vm7 = vweird.f32 %v920_v12 }
 0x1c8   :  { %v317_v28 = vmul.f32 0.5, %v316_v24  ;;  %v388_v41 = vmul.f32 %v380_v25, %v868_v48 }
 0x1c9   :  { %v358_v30 = vsub.f32 1.5, %v357_v26  ;;  %v384_v31 = vmul.f32 %v376_v27, %v865_v47 }
 0x1ca   :  { %v677_v32 = vpop.eup %676  ;;  %v318_v33 = vsub.f32 1.5, %v317_v28  ;;  %v397_v35 = vadd.f32 %v930_v22, %v388_v41 }
 0x1cb   :  { %v679_v36 = vpop.eup %678  ;;  %v359_v37 = vmul.f32 %v916_v9, %v358_v30  ;;  %v325_v48 = vmul.f32 %v677_v32, %v918_v11  ;;  %v393_v38 = vadd.f32 %v930_v22, %v384_v31  ;;  %vm331_vm3 = vweird.f32 %v677_v32 }
 0x1cc   :  { %v319_v39 = vmul.f32 %v675_v13, %v318_v33  ;;  %v365_v40 = vmul.f32 %v679_v36, %v920_v12  ;;  %v405_v43 = vmax.f32 %v397_v35, 0.0  ;;  %vm371_vm4 = vweird.f32 %v679_v36  ;;  %vm332_vm6 = vmor %vm330_vm5, %vm331_vm3 }
 0x1cd   :  { %v326_v44 = vmul.f32 %v677_v32, %v325_v48  ;;  %v401_v49 = vmax.f32 %v393_v38, 0.0  ;;  %v363_v46 = vsel %vm945_vm1, %v916_v9, %v359_v37  ;;  %vm372_vm8 = vmor %vm370_vm7, %vm371_vm4 }
 0x1ce   :  { %v323_v50 = vsel %vm322_vm2, %v675_v13, %v319_v39  ;;  %v366_v51 = vmul.f32 %v679_v36, %v365_v40  ;;  %v410_v52 = vpack.c.bf16 %v405_v43, %v404_v42  ;;  %v381_v61 = vmul.f32 %v910_v57, %v363_v46 }
 0x1cf   :  { %v327_v53 = vmul.f32 0.5, %v326_v44  ;;  %v408_v54 = vpack.c.bf16 %v401_v49, %v400_v45  ;;  %v377_v56 = vmul.f32 %v910_v57, %v323_v50 }
 0x1d0   :  { %v367_v55 = vmul.f32 0.5, %v366_v51  ;;  %495 = vmatmul.bf16.vlgmr.msra.gmra.mxu3 %v410_v52  ;;  %v389_v5 = vmul.f32 %v381_v61, %v875_v59 }
 0x1d1   :  { %v328_v58 = vsub.f32 1.5, %v327_v53  ;;  %485 = vmatmul.bf16.vlgmr.msra.gmra.mxu1 %v408_v54  ;;  %v385_v1 = vmul.f32 %v377_v56, %v878_v60 }
 0x1d2   :  { %v368_v62 = vsub.f32 1.5, %v367_v55  ;;  %v398_v13 = vadd.f32 %v930_v22, %v389_v5 }
 0x1d3   :  { %v329_v63 = vmul.f32 %v677_v32, %v328_v58  ;;  %v394_v10 = vadd.f32 %v930_v22, %v385_v1 }
 0x1d4   :  { %v369_v0 = vmul.f32 %v679_v36, %v368_v62  ;;  %v406_v59 = vmax.f32 %v398_v13, 0.0 }
 0x1d5   :  { %v333_v2 = vsel %vm332_vm6, %v677_v32, %v329_v63  ;;  %v402_v14 = vmax.f32 %v394_v10, 0.0 }
 0x1d6   :  { %v373_v6 = vsel %vm372_vm8, %v679_v36, %v369_v0  ;;  %v378_v7 = vmul.f32 %v910_v57, %v333_v2 }
 0x1d7   :  { %v382_v8 = vmul.f32 %v910_v57, %v373_v6  ;;  %v663_v57 = vld [vmem:[#allocation7 + $0x3] ss:$0 sm:$0xff] }
 0x1d8   :  { %v386_v9 = vmul.f32 %v378_v7, %v885_v3 }
 0x1d9   :  { %v390_v11 = vmul.f32 %v382_v8, %v888_v4 }
 0x1da   :  { %v395_v12 = vadd.f32 %v930_v22, %v386_v9 }
 0x1db   :  { %v399_v60 = vadd.f32 %v930_v22, %v390_v11 }
 0x1dc   :  { %v403_v15 = vmax.f32 %v395_v12, 0.0 }
 0x1dd   :  { %v407_v16 = vmax.f32 %v399_v60, 0.0 }
 0x1de   :  { %v409_v17 = vpack.c.bf16 %v403_v15, %v402_v14 }
 0x1df   :  { %v411_v18 = vpack.c.bf16 %v407_v16, %v406_v59 }
 0x1e1   :  { %490 = vmatmul.bf16.gmra.mxu1 %v409_v17  ;;  %500 = vmatmul.bf16.gmra.mxu3 %v411_v18 }
 0x24e   :  { %v486_v3 = vpop.f32.mrf.mxu1 }
 0x24f   :  { %v487_v19 = vadd.f32 %v663_v57, %v486_v3 }
 0x251   :  { %506 = vst [vmem:[#allocation10] sm:$0xff] %v487_v19 }
 0x253   :  { %v496_v20 = vpop.f32.mrf.mxu3 }
 0x254   :  { %v497_v4 = vadd.f32 %v663_v57, %v496_v20 }
 0x256   :  { %510 = vst [vmem:[#allocation10 + $0x20] sm:$0xff] %v497_v4  ;;  %v488_v21 = vpop.f32.mrf.mxu1 }
 0x257   :  { %v489_v23 = vadd.f32 %v663_v57, %v488_v21 }
 0x259   :  { %507 = vst [vmem:[#allocation10 + $0x8] sm:$0xff] %v489_v23 }
 0x25b   :  { %v498_v24 = vpop.f32.mrf.mxu3 }
 0x25c   :  { %v499_v22 = vadd.f32 %v663_v57, %v498_v24 }
 0x25e   :  { %511 = vst [vmem:[#allocation10 + $0x28] sm:$0xff] %v499_v22  ;;  %v491_v25 = vpop.f32.mrf.mxu1 }
 0x25f   :  { %v492_v26 = vadd.f32 %v663_v57, %v491_v25 }
 0x261   :  { %508 = vst [vmem:[#allocation10 + $0x10] sm:$0xff] %v492_v26 }
 0x264   :  { %v501_v27 = vpop.f32.mrf.mxu3 }
 0x265   :  { %v502_v28 = vadd.f32 %v663_v57, %v501_v27 }
 0x266   :  { %v493_v41 = vpop.f32.mrf.mxu1 }
 0x267   :  { %512 = vst [vmem:[#allocation10 + $0x30] sm:$0xff] %v502_v28  ;;  %v494_v29 = vadd.f32 %v663_v57, %v493_v41 }
 0x269   :  { %509 = vst [vmem:[#allocation10 + $0x18] sm:$0xff] %v494_v29 }
 0x26c   :  { %v503_v30 = vpop.f32.mrf.mxu3 }
 0x26d   :  { %v504_v31 = vadd.f32 %v663_v57, %v503_v30 }
 0x26f   :  { %513 = vst [vmem:[#allocation10 + $0x38] sm:$0xff] %v504_v31 }
 0x270   :  { %526 = dma.vmem_to_hbm [thread:$0]  %s519_s3, 1024, %s521_s11, [#allocation4], %s815_s12, %s815_s12, %s816_s13  }
 0x271   :  { %806 = dma.done.wait [#allocation4], 1024  }
 0x272   :  { %807 = vsyncadd [#allocation4], 4294966272 }
 0x273   :  { %531 = vsyncpa [#allocation3], 1 }
 0x274   :  { %532 = vsyncpa [#allocation6], 1 }
 0x275   :  { %533 = vsyncpa [#allocation9], 1 }
 0x276   :  { %534 = vsyncpa [#allocation4], 1 }

// kernel: tpu_custom_call.1
= control target key start
LH: loop header
LB: loop body
LE: loop exit
PB: predicated region body
PF: predicated region fallthrough
CT: control target
= control target key end

     0   :  { %9 = vsyncpa [#allocation3], 0  ;;  %s970_s0 = inlined_call_operand.hbm [shape: bf16[64,128], index: 0, kind: input, shape index: {}]   ;;  %s971_s1 = inlined_call_operand.hbm [shape: bf16[128,128], index: 1, kind: input, shape index: {}]   ;;  %s972_s2 = inlined_call_operand.hbm [shape: f32[8,128], index: 2, kind: input, shape index: {}]   ;;  %s973_s3 = inlined_call_operand.hbm [shape: bf16[128,128], index: 3, kind: input, shape index: {}]   ;;  %s974_s4 = inlined_call_operand.hbm [shape: f32[64,128], index: 4, kind: output, shape index: {}]  }
   0x1   :  { %10 = vsyncpa [#allocation6], 0 }
   0x2   :  { %11 = vsyncpa [#allocation9], 0 }
   0x3   :  { %12 = vsyncpa [#allocation4], 0  ;;  %s30_s17 = sshll.u32 %s971_s1, 4  ;;  %s808_s18 = smov [#allocation5]   ;;  %s31_s17 = int_to_ptr.hbm [resolvable:$true] %s30_s17 }
   0x4   :  { %s32_s19 = sshll.u32 %s808_s18, 4  ;;  %s17_s22 = sshll.u32 %s970_s0, 4  ;;  %s33_s19 = int_to_ptr.vmem [resolvable:$true] %s32_s19  ;;  %s18_s22 = int_to_ptr.hbm [resolvable:$true] %s17_s22 }
   0x5   :  { %s809_s23 = smov 64   ;;  %s810_s24 = smov 4  }
   0x6   :  { %38 = dma.hbm_to_vmem [thread:$0]  %s31_s17, 1024, %s33_s19, [#allocation6], %s809_s23, %s809_s23, %s810_s24  }
   0x7   :  { %s811_s25 = smov [#allocation2]   ;;  %s44_s29 = sshll.u32 %s972_s2, 4  ;;  %s45_s29 = int_to_ptr.hbm [resolvable:$true] %s44_s29 }
   0x8   :  { %s19_s26 = sshll.u32 %s811_s25, 4  ;;  %s54_s5 = sshll.u32 %s973_s3, 4  ;;  %s20_s26 = int_to_ptr.vmem [resolvable:$true] %s19_s26  ;;  %s55_s5 = int_to_ptr.hbm [resolvable:$true] %s54_s5 }
   0x9   :  { %25 = dma.hbm_to_vmem [thread:$0]  %s18_s22, 512, %s20_s26, [#allocation3], %s809_s23, %s809_s23, %s810_s24  }
   0xa   :  { %s812_s6 = smov [#allocation7]   ;;  %s813_s0 = smov [#allocation8]  }
   0xb   :  { %s46_s7 = sshll.u32 %s812_s6, 4  ;;  %s56_s8 = sshll.u32 %s813_s0, 4  ;;  %s47_s7 = int_to_ptr.vmem [resolvable:$true] %s46_s7  ;;  %s57_s8 = int_to_ptr.vmem [resolvable:$true] %s56_s8 }
   0xc   :  { %49 = dma.hbm_to_vmem [thread:$0]  %s45_s29, 128, %s47_s7, [#allocation6]  }
   0xd   :  { %62 = dma.hbm_to_vmem [thread:$0]  %s55_s5, 1024, %s57_s8, [#allocation9], %s809_s23, %s809_s23, %s810_s24  }
   0xe   :  { %800 = dma.done.wait [#allocation3], 512  }
   0xf   :  { %801 = vsyncadd [#allocation3], 4294966784 }
  0x10   :  { %802 = dma.done.wait [#allocation6], 1152  }
  0x11   :  { %803 = vsyncadd [#allocation6], 4294966144 }
  0x12   :  { %804 = dma.done.wait [#allocation9], 1024  }
  0x13   :  { %805 = vsyncadd [#allocation9], 4294966272  ;;  %v626_v0 = vld [vmem:[#allocation5 + $0x38] sm:$0xff]  ;;  %v625_v1 = vld [vmem:[#allocation5 + $0x30] sm:$0xff]  ;;  %v241_v29 = vlaneseq  ;;  %s814_s2 = smov [#allocation10]   ;;  %s520_s11 = sshll.u32 %s974_s4, 4  ;;  %s521_s11 = int_to_ptr.hbm [resolvable:$true] %s520_s11 }
  0x14   :  { %180 = vmatpush.bf16.msra.mxu0 %v626_v0  ;;  %635 = vmatpush.bf16.msra.mxu2 %v626_v0  ;;  %v624_v2 = vld [vmem:[#allocation5 + $0x28] sm:$0xff]  ;;  %v623_v3 = vld [vmem:[#allocation5 + $0x20] sm:$0xff]  ;;  %v622_v4 = vld [vmem:[#allocation5 + $0x18] sm:$0xff]  ;;  %s518_s3 = sshll.u32 %s814_s2, 4  ;;  %s815_s12 = smov 128   ;;  %s519_s3 = int_to_ptr.vmem [resolvable:$true] %s518_s3 }
  0x15   :  { %v621_v5 = vld [vmem:[#allocation5 + $0x10] sm:$0xff]  ;;  %v620_v6 = vld [vmem:[#allocation5 + $0x8] sm:$0xff]  ;;  %v619_v7 = vld [vmem:[#allocation5] sm:$0xff]  ;;  %v242_v30 = vand.u32 127, %v241_v29  ;;  %s816_s13 = smov 8  }
  0x16   :  { %v615_v8 = vld [vmem:[#allocation2] sm:$0xff]  ;;  %v617_v9 = vld [vmem:[#allocation2 + $0x10] sm:$0xff]  ;;  %v616_v10 = vld [vmem:[#allocation2 + $0x8] sm:$0xff] }
  0x17   :  { %v618_v11 = vld [vmem:[#allocation2 + $0x18] sm:$0xff]  ;;  %v660_v12 = vld [vmem:[#allocation7] ss:$0 sm:$0xff]  ;;  %vm243_vm0 = vcmp.lt.s32.totalorder %v242_v30, 64 }
  0x18   :  { %181 = vmatpush.bf16.msra.mxu0 %v625_v1  ;;  %636 = vmatpush.bf16.msra.mxu2 %v625_v1 }
  0x1c   :  { %182 = vmatpush.bf16.msra.mxu0 %v624_v2  ;;  %637 = vmatpush.bf16.msra.mxu2 %v624_v2 }
  0x20   :  { %183 = vmatpush.bf16.msra.mxu0 %v623_v3  ;;  %638 = vmatpush.bf16.msra.mxu2 %v623_v3 }
  0x24   :  { %184 = vmatpush.bf16.msra.mxu0 %v622_v4  ;;  %639 = vmatpush.bf16.msra.mxu2 %v622_v4 }
  0x28   :  { %185 = vmatpush.bf16.msra.mxu0 %v621_v5  ;;  %640 = vmatpush.bf16.msra.mxu2 %v621_v5 }
  0x2c   :  { %186 = vmatpush.bf16.msra.mxu0 %v620_v6  ;;  %641 = vmatpush.bf16.msra.mxu2 %v620_v6 }
  0x30   :  { %187 = vmatpush.bf16.msra.mxu0 %v619_v7  ;;  %642 = vmatpush.bf16.msra.mxu2 %v619_v7  ;;  %v634_v7 = vld [vmem:[#allocation8 + $0x38] sm:$0xff] }
  0x31   :  { %477 = vmatpush.bf16.msra.mxu1 %v634_v7  ;;  %643 = vmatpush.bf16.msra.mxu3 %v634_v7 }
  0x33   :  { %188 = vmatmul.bf16.vlgmr.msra.gmra.mxu0 %v615_v8  ;;  %198 = vmatmul.bf16.vlgmr.msra.gmra.mxu2 %v617_v9  ;;  %v633_v8 = vld [vmem:[#allocation8 + $0x30] sm:$0xff]  ;;  %v632_v9 = vld [vmem:[#allocation8 + $0x28] sm:$0xff] }
  0x35   :  { %478 = vmatpush.bf16.msra.mxu1 %v633_v8  ;;  %644 = vmatpush.bf16.msra.mxu3 %v633_v8 }
  0x39   :  { %479 = vmatpush.bf16.msra.mxu1 %v632_v9  ;;  %645 = vmatpush.bf16.msra.mxu3 %v632_v9 }
  0x43   :  { %193 = vmatmul.bf16.gmra.mxu0 %v616_v10  ;;  %203 = vmatmul.bf16.gmra.mxu2 %v618_v11  ;;  %v631_v10 = vld [vmem:[#allocation8 + $0x20] sm:$0xff] }
  0x44   :  { %480 = vmatpush.bf16.msra.mxu1 %v631_v10  ;;  %646 = vmatpush.bf16.msra.mxu3 %v631_v10 }
  0xb0   :  { %v189_v13 = vpop.f32.mrf.mxu0 }
  0xb1   :  { %v190_v14 = vadd.f32 %v660_v12, %v189_v13 }
  0xb3   :  { %209 = vadd.xlane.f32.xlu1 %v190_v14 }
  0xb6   :  { %v199_v15 = vpop.f32.mrf.mxu2 }
  0xb7   :  { %v200_v16 = vadd.f32 %v660_v12, %v199_v15  ;;  %v629_v15 = vld [vmem:[#allocation8 + $0x10] sm:$0xff] }
  0xb8   :  { %v191_v17 = vpop.f32.mrf.mxu0 }
  0xb9   :  { %v192_v18 = vadd.f32 %v660_v12, %v191_v17  ;;  %217 = vadd.xlane.f32.xlu0 %v200_v16 }
  0xbb   :  { %211 = vadd.xlane.f32.xlu1 %v192_v18 }
  0xbe   :  { %v201_v19 = vpop.f32.mrf.mxu2 }
  0xbf   :  { %v202_v20 = vadd.f32 %v660_v12, %v201_v19 }
  0xc0   :  { %v194_v21 = vpop.f32.mrf.mxu0 }
  0xc1   :  { %219 = vadd.xlane.f32.xlu0 %v202_v20  ;;  %v195_v22 = vadd.f32 %v660_v12, %v194_v21 }
  0xc6   :  { %v204_v23 = vpop.f32.mrf.mxu2 }
  0xc7   :  { %v205_v24 = vadd.f32 %v660_v12, %v204_v23 }
  0xc8   :  { %v196_v25 = vpop.f32.mrf.mxu0 }
  0xc9   :  { %v197_v26 = vadd.f32 %v660_v12, %v196_v25  ;;  %221 = vadd.xlane.f32.xlu2 %v205_v24  ;;  %213 = vadd.xlane.f32.xlu0 %v195_v22 }
  0xcb   :  { %215 = vadd.xlane.f32.xlu1 %v197_v26 }
  0xce   :  { %v206_v27 = vpop.f32.mrf.mxu2 }
  0xcf   :  { %v207_v28 = vadd.f32 %v660_v12, %v206_v27  ;;  %v630_v12 = vld [vmem:[#allocation8 + $0x18] sm:$0xff] }
  0xd0   :  { %481 = vmatpush.bf16.msra.mxu1 %v630_v12  ;;  %647 = vmatpush.bf16.msra.mxu3 %v630_v12 }
  0xd1   :  { %223 = vadd.xlane.f32.xlu2 %v207_v28 }
  0xd4   :  { %482 = vmatpush.bf16.msra.mxu1 %v629_v15  ;;  %648 = vmatpush.bf16.msra.mxu3 %v629_v15 }
 0x126   :  { %v210_v31 = vpop.xlane.xlu1 %209 }
 0x127   :  { %v225_v32 = vmul.f32 0.015625, %v210_v31 }
 0x129   :  { %v233_v33 = vsub.f32 %v190_v14, %v225_v32 }
 0x12b   :  { %v855_v34 = vsel %vm243_vm0, %v233_v33, 0.0 }
 0x12c   :  { %v218_v35 = vpop.xlane.xlu0 %217  ;;  %v254_v36 = vmul.f32 %v855_v34, %v855_v34 }
 0x12d   :  { %v229_v37 = vmul.f32 0.015625, %v218_v35 }
 0x12e   :  { %262 = vadd.xlane.f32.xlu1 %v254_v36  ;;  %v212_v38 = vpop.xlane.xlu1 %211 }
 0x12f   :  { %v237_v39 = vsub.f32 %v200_v16, %v229_v37  ;;  %v226_v40 = vmul.f32 0.015625, %v212_v38 }
 0x131   :  { %v860_v41 = vsel %vm243_vm0, %v237_v39, 0.0  ;;  %v234_v43 = vsub.f32 %v192_v18, %v226_v40  ;;  %v628_v18 = vld [vmem:[#allocation8 + $0x8] sm:$0xff] }
 0x132   :  { %v258_v42 = vmul.f32 %v860_v41, %v860_v41  ;;  %483 = vmatpush.bf16.msra.mxu1 %v628_v18  ;;  %649 = vmatpush.bf16.msra.mxu3 %v628_v18 }
 0x133   :  { %v865_v47 = vsel %vm243_vm0, %v234_v43, 0.0 }
 0x134   :  { %270 = vadd.xlane.f32.xlu2 %v258_v42  ;;  %v220_v44 = vpop.xlane.xlu0 %219  ;;  %v255_v50 = vmul.f32 %v865_v47, %v865_v47 }
 0x135   :  { %v230_v45 = vmul.f32 0.015625, %v220_v44 }
 0x137   :  { %v238_v46 = vsub.f32 %v202_v20, %v230_v45 }
 0x139   :  { %v868_v48 = vsel %vm243_vm0, %v238_v46, 0.0 }
 0x13a   :  { %v259_v49 = vmul.f32 %v868_v48, %v868_v48 }
 0x13c   :  { %v222_v51 = vpop.xlane.xlu2 %221  ;;  %272 = vadd.xlane.f32.xlu0 %v259_v49  ;;  %v214_v52 = vpop.xlane.xlu0 %213  ;;  %264 = vadd.xlane.f32.xlu2 %v255_v50 }
 0x13d   :  { %v231_v53 = vmul.f32 0.015625, %v222_v51  ;;  %v227_v54 = vmul.f32 0.015625, %v214_v52 }
 0x13e   :  { %v216_v55 = vpop.xlane.xlu1 %215 }
 0x13f   :  { %v239_v56 = vsub.f32 %v205_v24, %v231_v53  ;;  %v235_v57 = vsub.f32 %v195_v22, %v227_v54  ;;  %v228_v58 = vmul.f32 0.015625, %v216_v55  ;;  %v627_v22 = vld [vmem:[#allocation8] sm:$0xff] }
 0x140   :  { %484 = vmatpush.bf16.msra.mxu1 %v627_v22  ;;  %650 = vmatpush.bf16.msra.mxu3 %v627_v22  ;;  %v930_v22 = vld [vmem:[#allocation7 + $0x2] ss:$0 sm:$0xff] }
 0x141   :  { %v875_v59 = vsel %vm243_vm0, %v239_v56, 0.0  ;;  %v878_v60 = vsel %vm243_vm0, %v235_v57, 0.0  ;;  %v236_v63 = vsub.f32 %v197_v26, %v228_v58  ;;  %v910_v57 = vld [vmem:[#allocation7 + $0x1] ss:$0 sm:$0xff] }
 0x142   :  { %v260_v61 = vmul.f32 %v875_v59, %v875_v59  ;;  %v256_v62 = vmul.f32 %v878_v60, %v878_v60 }
 0x143   :  { %v885_v3 = vsel %vm243_vm0, %v236_v63, 0.0 }
 0x144   :  { %v224_v0 = vpop.xlane.xlu2 %223  ;;  %274 = vadd.xlane.f32.xlu0 %v260_v61  ;;  %266 = vadd.xlane.f32.xlu2 %v256_v62  ;;  %v257_v6 = vmul.f32 %v885_v3, %v885_v3 }
 0x145   :  { %v232_v1 = vmul.f32 0.015625, %v224_v0 }
 0x147   :  { %v240_v2 = vsub.f32 %v207_v28, %v232_v1 }
 0x149   :  { %v888_v4 = vsel %vm243_vm0, %v240_v2, 0.0 }
 0x14a   :  { %v261_v5 = vmul.f32 %v888_v4, %v888_v4 }
 0x14c   :  { %276 = vadd.xlane.f32.xlu1 %v261_v5  ;;  %268 = vadd.xlane.f32.xlu0 %v257_v6 }
 0x1a1   :  { %v263_v11 = vpop.xlane.xlu1 %262 }
 0x1a2   :  { %v278_v13 = vmul.f32 0.015625, %v263_v11 }
 0x1a4   :  { %v286_v14 = vadd.f32 1e-05, %v278_v13 }
 0x1a6   :  { %664 = vrsqrt.f32 %v286_v14  ;;  %vm300_vm4 = vweird.f32 %v286_v14 }
 0x1a7   :  { %v271_v16 = vpop.xlane.xlu2 %270 }
 0x1a8   :  { %v282_v17 = vmul.f32 0.015625, %v271_v16 }
 0x1aa   :  { %v290_v19 = vadd.f32 1e-05, %v282_v17 }
 0x1ac   :  { %v665_v20 = vpop.eup %664  ;;  %666 = vrsqrt.f32 %v290_v19  ;;  %vm340_vm3 = vweird.f32 %v290_v19 }
 0x1ad   :  { %v295_v21 = vmul.f32 %v665_v20, %v286_v14  ;;  %vm301_vm2 = vweird.f32 %v665_v20 }
 0x1ae   :  { %vm903_vm6 = vmor %vm300_vm4, %vm301_vm2 }
 0x1af   :  { %v296_v23 = vmul.f32 %v665_v20, %v295_v21  ;;  %v273_v24 = vpop.xlane.xlu0 %272  ;;  %v265_v25 = vpop.xlane.xlu2 %264 }
 0x1b0   :  { %v283_v26 = vmul.f32 0.015625, %v273_v24  ;;  %v279_v27 = vmul.f32 0.015625, %v265_v25 }
 0x1b1   :  { %v297_v29 = vmul.f32 0.5, %v296_v23 }
 0x1b2   :  { %v667_v28 = vpop.eup %666  ;;  %v291_v30 = vadd.f32 1e-05, %v283_v26  ;;  %v287_v31 = vadd.f32 1e-05, %v279_v27 }
 0x1b3   :  { %v335_v32 = vmul.f32 %v667_v28, %v290_v19  ;;  %v298_v35 = vsub.f32 1.5, %v297_v29  ;;  %vm341_vm1 = vweird.f32 %v667_v28 }
 0x1b4   :  { %668 = vrsqrt.f32 %v291_v30  ;;  %vm898_vm5 = vmor %vm340_vm3, %vm341_vm1  ;;  %vm350_vm9 = vweird.f32 %v291_v30  ;;  %vm310_vm10 = vweird.f32 %v287_v31 }
 0x1b5   :  { %v336_v33 = vmul.f32 %v667_v28, %v335_v32  ;;  %670 = vrsqrt.f32 %v287_v31  ;;  %v299_v44 = vmul.f32 %v665_v20, %v298_v35 }
 0x1b7   :  { %v337_v36 = vmul.f32 0.5, %v336_v33  ;;  %v275_v37 = vpop.xlane.xlu0 %274  ;;  %v267_v38 = vpop.xlane.xlu2 %266  ;;  %v303_v58 = vsel %vm903_vm6, %v665_v20, %v299_v44 }
 0x1b8   :  { %v284_v39 = vmul.f32 0.015625, %v275_v37  ;;  %v280_v40 = vmul.f32 0.015625, %v267_v38  ;;  %v375_v8 = vmul.f32 %v910_v57, %v303_v58 }
 0x1b9   :  { %v338_v42 = vsub.f32 1.5, %v337_v36 }
 0x1ba   :  { %v669_v43 = vpop.eup %668  ;;  %v894_v45 = vadd.f32 1e-05, %v284_v39  ;;  %v896_v46 = vadd.f32 1e-05, %v280_v40  ;;  %v383_v21 = vmul.f32 %v375_v8, %v855_v34 }
 0x1bb   :  { %v671_v49 = vpop.eup %670  ;;  %v339_v50 = vmul.f32 %v667_v28, %v338_v42  ;;  %v345_v51 = vmul.f32 %v669_v43, %v291_v30  ;;  %vm351_vm7 = vweird.f32 %v669_v43 }
 0x1bc   :  { %v305_v53 = vmul.f32 %v671_v49, %v287_v31  ;;  %672 = vrsqrt.f32 %v894_v45  ;;  %vm311_vm8 = vweird.f32 %v671_v49  ;;  %vm352_vm11 = vmor %vm350_vm9, %vm351_vm7  ;;  %v392_v34 = vadd.f32 %v930_v22, %v383_v21 }
 0x1bd   :  { %v343_v55 = vsel %vm898_vm5, %v667_v28, %v339_v50  ;;  %v346_v56 = vmul.f32 %v669_v43, %v345_v51  ;;  %674 = vrsqrt.f32 %v896_v46  ;;  %vm312_vm12 = vmor %vm310_vm10, %vm311_vm8  ;;  %vm360_vm14 = vweird.f32 %v894_v45 }
 0x1be   :  { %v306_v61 = vmul.f32 %v671_v49, %v305_v53  ;;  %v379_v6 = vmul.f32 %v910_v57, %v343_v55  ;;  %vm320_vm0 = vweird.f32 %v896_v46 }
 0x1bf   :  { %v347_v62 = vmul.f32 0.5, %v346_v56  ;;  %v269_v63 = vpop.xlane.xlu0 %268  ;;  %v277_v0 = vpop.xlane.xlu1 %276 }
 0x1c0   :  { %v307_v1 = vmul.f32 0.5, %v306_v61  ;;  %v281_v2 = vmul.f32 0.015625, %v269_v63  ;;  %v285_v5 = vmul.f32 0.015625, %v277_v0  ;;  %v387_v18 = vmul.f32 %v379_v6, %v860_v41 }
 0x1c1   :  { %v348_v7 = vsub.f32 1.5, %v347_v62 }
 0x1c2   :  { %v916_v9 = vpop.eup %672  ;;  %v308_v10 = vsub.f32 1.5, %v307_v1  ;;  %v918_v11 = vadd.f32 1e-05, %v281_v2  ;;  %v920_v12 = vadd.f32 1e-05, %v285_v5  ;;  %v396_v29 = vadd.f32 %v930_v22, %v387_v18 }
 0x1c3   :  { %v675_v13 = vpop.eup %674  ;;  %v349_v14 = vmul.f32 %v669_v43, %v348_v7  ;;  %v355_v15 = vmul.f32 %v916_v9, %v894_v45  ;;  %vm361_vm13 = vweird.f32 %v916_v9  ;;  %v400_v45 = vmax.f32 %v392_v34, 0.0 }
 0x1c4   :  { %v309_v16 = vmul.f32 %v671_v49, %v308_v10  ;;  %v315_v17 = vmul.f32 %v675_v13, %v896_v46  ;;  %676 = vrsqrt.f32 %v918_v11  ;;  %vm321_vm15 = vweird.f32 %v675_v13  ;;  %vm945_vm1 = vmor %vm360_vm14, %vm361_vm13 }
 0x1c5   :  { %v353_v19 = vsel %vm352_vm11, %v669_v43, %v349_v14  ;;  %v356_v20 = vmul.f32 %v916_v9, %v355_v15  ;;  %678 = vrsqrt.f32 %v920_v12  ;;  %v404_v42 = vmax.f32 %v396_v29, 0.0  ;;  %vm322_vm2 = vmor %vm320_vm0, %vm321_vm15 }
 0x1c6   :  { %v313_v23 = vsel %vm312_vm12, %v671_v49, %v309_v16  ;;  %v316_v24 = vmul.f32 %v675_v13, %v315_v17  ;;  %v380_v25 = vmul.f32 %v910_v57, %v353_v19  ;;  %vm330_vm5 = vweird.f32 %v918_v11 }
 0x1c7   :  { %v357_v26 = vmul.f32 0.5, %v356_v20  ;;  %v376_v27 = vmul.f32 %v910_v57, %v313_v23  ;;  %vm370_vm7 = vweird.f32 %v920_v12 }
 0x1c8   :  { %v317_v28 = vmul.f32 0.5, %v316_v24  ;;  %v388_v41 = vmul.f32 %v380_v25, %v868_v48 }
 0x1c9   :  { %v358_v30 = vsub.f32 1.5, %v357_v26  ;;  %v384_v31 = vmul.f32 %v376_v27, %v865_v47 }
 0x1ca   :  { %v677_v32 = vpop.eup %676  ;;  %v318_v33 = vsub.f32 1.5, %v317_v28  ;;  %v397_v35 = vadd.f32 %v930_v22, %v388_v41 }
 0x1cb   :  { %v679_v36 = vpop.eup %678  ;;  %v359_v37 = vmul.f32 %v916_v9, %v358_v30  ;;  %v325_v48 = vmul.f32 %v677_v32, %v918_v11  ;;  %v393_v38 = vadd.f32 %v930_v22, %v384_v31  ;;  %vm331_vm3 = vweird.f32 %v677_v32 }
 0x1cc   :  { %v319_v39 = vmul.f32 %v675_v13, %v318_v33  ;;  %v365_v40 = vmul.f32 %v679_v36, %v920_v12  ;;  %v405_v43 = vmax.f32 %v397_v35, 0.0  ;;  %vm371_vm4 = vweird.f32 %v679_v36  ;;  %vm332_vm6 = vmor %vm330_vm5, %vm331_vm3 }
 0x1cd   :  { %v326_v44 = vmul.f32 %v677_v32, %v325_v48  ;;  %v401_v49 = vmax.f32 %v393_v38, 0.0  ;;  %v363_v46 = vsel %vm945_vm1, %v916_v9, %v359_v37  ;;  %vm372_vm8 = vmor %vm370_vm7, %vm371_vm4 }
 0x1ce   :  { %v323_v50 = vsel %vm322_vm2, %v675_v13, %v319_v39  ;;  %v366_v51 = vmul.f32 %v679_v36, %v365_v40  ;;  %v410_v52 = vpack.c.bf16 %v405_v43, %v404_v42  ;;  %v381_v61 = vmul.f32 %v910_v57, %v363_v46 }
 0x1cf   :  { %v327_v53 = vmul.f32 0.5, %v326_v44  ;;  %v408_v54 = vpack.c.bf16 %v401_v49, %v400_v45  ;;  %v377_v56 = vmul.f32 %v910_v57, %v323_v50 }
 0x1d0   :  { %v367_v55 = vmul.f32 0.5, %v366_v51  ;;  %495 = vmatmul.bf16.vlgmr.msra.gmra.mxu3 %v410_v52  ;;  %v389_v5 = vmul.f32 %v381_v61, %v875_v59 }
 0x1d1   :  { %v328_v58 = vsub.f32 1.5, %v327_v53  ;;  %485 = vmatmul.bf16.vlgmr.msra.gmra.mxu1 %v408_v54  ;;  %v385_v1 = vmul.f32 %v377_v56, %v878_v60 }
 0x1d2   :  { %v368_v62 = vsub.f32 1.5, %v367_v55  ;;  %v398_v13 = vadd.f32 %v930_v22, %v389_v5 }
 0x1d3   :  { %v329_v63 = vmul.f32 %v677_v32, %v328_v58  ;;  %v394_v10 = vadd.f32 %v930_v22, %v385_v1 }
 0x1d4   :  { %v369_v0 = vmul.f32 %v679_v36, %v368_v62  ;;  %v406_v59 = vmax.f32 %v398_v13, 0.0 }
 0x1d5   :  { %v333_v2 = vsel %vm332_vm6, %v677_v32, %v329_v63  ;;  %v402_v14 = vmax.f32 %v394_v10, 0.0 }
 0x1d6   :  { %v373_v6 = vsel %vm372_vm8, %v679_v36, %v369_v0  ;;  %v378_v7 = vmul.f32 %v910_v57, %v333_v2 }
 0x1d7   :  { %v382_v8 = vmul.f32 %v910_v57, %v373_v6  ;;  %v663_v57 = vld [vmem:[#allocation7 + $0x3] ss:$0 sm:$0xff] }
 0x1d8   :  { %v386_v9 = vmul.f32 %v378_v7, %v885_v3 }
 0x1d9   :  { %v390_v11 = vmul.f32 %v382_v8, %v888_v4 }
 0x1da   :  { %v395_v12 = vadd.f32 %v930_v22, %v386_v9 }
 0x1db   :  { %v399_v60 = vadd.f32 %v930_v22, %v390_v11 }
 0x1dc   :  { %v403_v15 = vmax.f32 %v395_v12, 0.0 }
 0x1dd   :  { %v407_v16 = vmax.f32 %v399_v60, 0.0 }
 0x1de   :  { %v409_v17 = vpack.c.bf16 %v403_v15, %v402_v14 }
 0x1df   :  { %v411_v18 = vpack.c.bf16 %v407_v16, %v406_v59 }
 0x1e1   :  { %490 = vmatmul.bf16.gmra.mxu1 %v409_v17  ;;  %500 = vmatmul.bf16.gmra.mxu3 %v411_v18 }
 0x24e   :  { %v486_v3 = vpop.f32.mrf.mxu1 }
 0x24f   :  { %v487_v19 = vadd.f32 %v663_v57, %v486_v3 }
 0x251   :  { %506 = vst [vmem:[#allocation10] sm:$0xff] %v487_v19 }
 0x253   :  { %v496_v20 = vpop.f32.mrf.mxu3 }
 0x254   :  { %v497_v4 = vadd.f32 %v663_v57, %v496_v20 }
 0x256   :  { %510 = vst [vmem:[#allocation10 + $0x20] sm:$0xff] %v497_v4  ;;  %v488_v21 = vpop.f32.mrf.mxu1 }
 0x257   :  { %v489_v23 = vadd.f32 %v663_v57, %v488_v21 }
 0x259   :  { %507 = vst [vmem:[#allocation10 + $0x8] sm:$0xff] %v489_v23 }
 0x25b   :  { %v498_v24 = vpop.f32.mrf.mxu3 }
 0x25c   :  { %v499_v22 = vadd.f32 %v663_v57, %v498_v24 }
 0x25e   :  { %511 = vst [vmem:[#allocation10 + $0x28] sm:$0xff] %v499_v22  ;;  %v491_v25 = vpop.f32.mrf.mxu1 }
 0x25f   :  { %v492_v26 = vadd.f32 %v663_v57, %v491_v25 }
 0x261   :  { %508 = vst [vmem:[#allocation10 + $0x10] sm:$0xff] %v492_v26 }
 0x264   :  { %v501_v27 = vpop.f32.mrf.mxu3 }
 0x265   :  { %v502_v28 = vadd.f32 %v663_v57, %v501_v27 }
 0x266   :  { %v493_v41 = vpop.f32.mrf.mxu1 }
 0x267   :  { %512 = vst [vmem:[#allocation10 + $0x30] sm:$0xff] %v502_v28  ;;  %v494_v29 = vadd.f32 %v663_v57, %v493_v41 }
 0x269   :  { %509 = vst [vmem:[#allocation10 + $0x18] sm:$0xff] %v494_v29 }
 0x26c   :  { %v503_v30 = vpop.f32.mrf.mxu3 }
 0x26d   :  { %v504_v31 = vadd.f32 %v663_v57, %v503_v30 }
 0x26f   :  { %513 = vst [vmem:[#allocation10 + $0x38] sm:$0xff] %v504_v31 }
 0x270   :  { %526 = dma.vmem_to_hbm [thread:$0]  %s519_s3, 1024, %s521_s11, [#allocation4], %s815_s12, %s815_s12, %s816_s13  }
 0x271   :  { %806 = dma.done.wait [#allocation4], 1024  }
 0x272   :  { %807 = vsyncadd [#allocation4], 4294966272 }
 0x273   :  { %531 = vsyncpa [#allocation3], 1 }
 0x274   :  { %532 = vsyncpa [#allocation6], 1 }
 0x275   :  { %533 = vsyncpa [#allocation9], 1 }
 0x276   :  { %534 = vsyncpa [#allocation4], 1 }

</bundles_post_ra>
